<compile_context>
chip_gen: v7x
topology: tpu7x:2x2x1
jax: 0.10.0
libtpu: 0.0.40
codegen_flags: <defaults>
</compile_context>

<pallas_src>
import jax
import jax.numpy as jnp
from jax.experimental import pallas as pl
from jax.experimental.pallas import tpu as pltpu

_LANE = 128              # lane width  (last-dim tiling quantum)
_SUB = 8                 # sublane     (second-to-last-dim quantum)
_DEF_BLOCK_K = 512       # K tile when the feature dim must be tiled
_DEF_RESIDENT_K = 2048   # keep K un-tiled (single block) up to this many features


def _round_up(n, m):
    return ((n + m - 1) // m) * m


# --------------------------------------------------------------------------- #
# Kernels
# --------------------------------------------------------------------------- #
def _linear_kernel(x_ref, w_ref, b_ref, o_ref):
    """Single-K-block path: o = x @ w + b.

    w is already stored as (tk, tn) in the compute dtype -> natural (M,K)x(K,N)
    contraction, no RHS transpose, no per-step weight cast.  Only the streamed
    x tile is cast (cheap, once per x element per class tile).
    """
    x = x_ref[...].astype(w_ref.dtype)
    acc = jnp.dot(x, w_ref[...], preferred_element_type=jnp.float32)
    o_ref[...] = (acc + b_ref[...]).astype(o_ref.dtype)
    # TODO(synk): if a downstream softmax / cross-entropy epilogue is wanted,
    # fuse it here so padded f32 logits never round-trip HBM (small-C regime is
    # store-bandwidth bound); the module's forward returns raw logits, so we don't.


def _linear_kernel_kacc(x_ref, w_ref, b_ref, o_ref, acc_ref):
    """K-tiled path with a VMEM f32 accumulator (reduction axis = grid axis 2)."""
    k = pl.program_id(2)

    @pl.when(k == 0)
    def _():
        acc_ref[...] = jnp.zeros_like(acc_ref)

    x = x_ref[...].astype(w_ref.dtype)
    acc_ref[...] += jnp.dot(x, w_ref[...], preferred_element_type=jnp.float32)

    @pl.when(k == pl.num_programs(2) - 1)
    def _():
        o_ref[...] = (acc_ref[...] + b_ref[...]).astype(o_ref.dtype)


# --------------------------------------------------------------------------- #
# Parameter preparation (run ONCE, outside the jitted forward)
# --------------------------------------------------------------------------- #
def prepare_params(weight, bias, *, compute_dtype=jnp.bfloat16,
                   block_k=_DEF_BLOCK_K, max_resident_k=_DEF_RESIDENT_K):
    """Convert nn.Linear params to the kernel's stored layout.

    weight: (C, D) f32  ->  (Dpad, Cpad) compute_dtype   (lane-dense class dim)
    bias:   (C,)   f32  ->  (1, Cpad)    f32
    """
    C, D = weight.shape
    Cpad = _round_up(C, _LANE)
    Dpad = D if D <= max_resident_k else _round_up(D, block_k)
    w = jnp.zeros((Dpad, Cpad), dtype=compute_dtype)
    w = w.at[:D, :C].set(weight.T.astype(compute_dtype))
    b = jnp.zeros((1, Cpad), dtype=jnp.float32)
    b = b.at[0, :C].set(bias.astype(jnp.float32))
    return w, b


# --------------------------------------------------------------------------- #
# Tiling / budgeting helpers
# --------------------------------------------------------------------------- #
def _vmem_cap_bytes():
    """~80% of physical VMEM per TensorCore (102 MiB v5e/v6e, ~51 MiB v7x)."""
    try:
        cap = int(pltpu.get_tpu_info().vmem_capacity_bytes)
    except Exception:           # conservative fallback (v7x-sized)
        cap = 64 << 20
    return int(cap * 0.8)


def _pick_tm(batch, block_m):
    """Batch tile: prefer >= 8 tiles (>= 4 per v7x TC) while keeping >= 256 rows."""
    b_aligned = _round_up(batch, _SUB)
    tm = min(_round_up(block_m, _SUB), b_aligned)
    while tm >= 512 and (b_aligned + tm - 1) // tm < 8:
        tm //= 2
    return tm


def _spec(shape, index_map, resident):
    """Single-buffer grid-invariant blocks (no duplicate VMEM pipeline buffer)."""
    if resident and hasattr(pl, "Buffered"):
        try:
            return pl.BlockSpec(shape, index_map, pipeline_mode=pl.Buffered(1))
        except TypeError:
            pass
    return pl.BlockSpec(shape, index_map)


# --------------------------------------------------------------------------- #
# Forward
# --------------------------------------------------------------------------- #
def softmax_regression_forward(x, w_prepared, b_prepared, *, num_classes,
                               block_m=512, block_n=256,
                               block_k=_DEF_BLOCK_K,
                               max_resident_k=_DEF_RESIDENT_K):
    """logits = x @ weight.T + bias   (matches torch nn.Linear forward).

    x:          (B, D)       f32
    w_prepared: (Dpad, Cpad) compute dtype (from prepare_params)
    b_prepared: (1, Cpad)    f32
    returns     (B, num_classes) f32 logits
    """
    B, D = x.shape
    Dpad, Cpad = w_prepared.shape
    C = num_classes

    # ---- tile sizes ---------------------------------------------------------
    # K: single resident block when small, else block_k tiles (reduction axis).
    tk = Dpad if Dpad <= max_resident_k else block_k
    grid_k = Dpad // tk
    # N: 256 fills the v6e/v7x MXU width; 128 always divides Cpad (v5e-friendly).
    tn = block_n if (Cpad >= block_n and Cpad % block_n == 0) else _LANE
    grid_n = Cpad // tn
    # M: enough batch tiles to pipeline / feed both v7x TensorCores.
    tm = _pick_tm(B, block_m)

    w_resident = (grid_n == 1 and grid_k == 1)
    b_resident = (grid_n == 1)
    w_bufs = 1 if w_resident else 2
    b_bufs = 1 if b_resident else 2

    # ---- VMEM budget (per TensorCore, counts real pipeline buffer counts) ---
    cap = _vmem_cap_bytes()

    def est(tm_):
        return (2 * tm_ * tk * x.dtype.itemsize                 # x tiles (dbl-buf)
                + w_bufs * tk * tn * w_prepared.dtype.itemsize  # weight tiles
                + b_bufs * tn * 4                                # bias
                + 2 * tm_ * tn * 4                               # out tiles (dbl-buf)
                + (tm_ * tn * 4 if grid_k > 1 else 0)            # f32 accumulator
                + (2 << 20))                                     # headroom

    while est(tm) > cap and tm > _SUB:
        tm = max(_SUB, _round_up(tm // 2, _SUB))

    Bpad = _round_up(B, tm)
    grid_m = Bpad // tm
    if Bpad != B or Dpad != D:
        x = jnp.pad(x, ((0, Bpad - B), (0, Dpad - D)))

    vmem_limit = int(min(max(est(tm), 4 << 20), cap))

    # ---- specs / kernel selection -------------------------------------------
    in_specs = [
        pl.BlockSpec((tm, tk), lambda i, j, k: (i, k)),           # x: streamed
        _spec((tk, tn), lambda i, j, k: (k, j), w_resident),      # weight
        _spec((1, tn), lambda i, j, k: (0, j), b_resident),       # bias (f32)
    ]
    out_specs = pl.BlockSpec((tm, tn), lambda i, j, k: (i, j))

    if grid_k > 1:
        kernel = _linear_kernel_kacc
        scratch_shapes = [pltpu.VMEM((tm, tn), jnp.float32)]
    else:
        kernel = _linear_kernel
        scratch_shapes = []

    cost = pl.CostEstimate(
        flops=2 * Bpad * Dpad * Cpad,
        transcendentals=0,
        bytes_accessed=int(x.dtype.itemsize * Bpad * Dpad * grid_n
                           + w_prepared.dtype.itemsize * Dpad * Cpad * grid_m
                           + 4 * Cpad
                           + 4 * Bpad * Cpad),
    )

    out = pl.pallas_call(
        kernel,
        out_shape=jax.ShapeDtypeStruct((Bpad, Cpad), jnp.float32),
        grid_spec=pltpu.PrefetchScalarGridSpec(
            num_scalar_prefetch=0,
            grid=(grid_m, grid_n, grid_k),
            in_specs=in_specs,
            out_specs=out_specs,
            scratch_shapes=scratch_shapes,
        ),
        compiler_params=pltpu.CompilerParams(
            dimension_semantics=("parallel", "parallel", "arbitrary"),
            vmem_limit_bytes=vmem_limit,
        ),
        cost_estimate=cost,
    )(x, w_prepared, b_prepared)

    # Strip batch/class padding back to the logical shape.
    return out[:B, :C]


if __name__ == "__main__":
    num_classes = 10
    input_dim = 32
    batch = 8

    key = jax.random.PRNGKey(0)
    kx, kw, kb = jax.random.split(key, 3)

    # Deterministic synthetic params (shapes match nn.Linear(input_dim, num_classes)).
    bound = float(input_dim) ** -0.5
    weight = jax.random.uniform(kw, (num_classes, input_dim),
                                minval=-bound, maxval=bound, dtype=jnp.float32)
    bias = jax.random.uniform(kb, (num_classes,),
                              minval=-bound, maxval=bound, dtype=jnp.float32)
    x = jax.random.normal(kx, (batch, input_dim), dtype=jnp.float32)

    fwd = jax.jit(softmax_regression_forward,
                  static_argnames=("num_classes", "block_m", "block_n",
                                   "block_k", "max_resident_k"))

    ref = x @ weight.T + bias

    # 1) Exact-parity path: f32 stored params.
    w32, b32 = prepare_params(weight, bias, compute_dtype=jnp.float32)
    logits = fwd(x, w32, b32, num_classes=num_classes)
    jax.block_until_ready(logits)
    assert logits.shape == (batch, num_classes)
    assert jnp.allclose(logits, ref, atol=1e-5, rtol=1e-5)

    # 2) Production path: bf16 stored weight (half DMA/VMEM), f32 MXU accumulate.
    wbf, bbf = prepare_params(weight, bias, compute_dtype=jnp.bfloat16)
    logits_bf16 = fwd(x, wbf, bbf, num_classes=num_classes)
    jax.block_until_ready(logits_bf16)
    assert jnp.allclose(logits_bf16, ref, atol=3e-2, rtol=3e-2)

    # 3) K-tiled accumulator path (grid_k > 1) on a modest synthetic shape.
    D2, C2, B2 = 256, 12, 64
    k2x, k2w, k2b = jax.random.split(jax.random.PRNGKey(1), 3)
    w2 = jax.random.normal(k2w, (C2, D2), dtype=jnp.float32) * 0.05
    b2 = jax.random.normal(k2b, (C2,), dtype=jnp.float32) * 0.05
    x2 = jax.random.normal(k2x, (B2, D2), dtype=jnp.float32)
    w2p, b2p = prepare_params(w2, b2, compute_dtype=jnp.float32,
                              block_k=128, max_resident_k=128)
    logits2 = fwd(x2, w2p, b2p, num_classes=C2, block_k=128, max_resident_k=128)
    jax.block_until_ready(logits2)
    assert jnp.allclose(logits2, x2 @ w2.T + b2, atol=1e-4, rtol=1e-4)

    print("KERNEL_OK")
</pallas_src>

<mosaic_0001>
module attributes {stable_mosaic.version = 11 : i64} {
  func.func @_linear_kernel(%arg0: i32, %arg1: i32, %arg2: i32, %arg3: memref<8x32xf32, #tpu.memory_space<vmem>>, %arg4: memref<32x128xf32, #tpu.memory_space<vmem>>, %arg5: memref<1x128xf32, #tpu.memory_space<vmem>>, %arg6: memref<8x128xf32, #tpu.memory_space<vmem>>) attributes {dimension_semantics = [#tpu.dimension_semantics<parallel>, #tpu.dimension_semantics<parallel>, #tpu.dimension_semantics<arbitrary>], iteration_bounds = array<i64: 1, 1, 1>, scalar_prefetch = 0 : i64, scratch_operands = 0 : i64, tpu.core_type = #tpu.core_type<tc>, window_params = [{transform_indices = @transform_0, window_bounds = array<i64: 8, 32>}, {pipeline_mode = #tpu.pipeline_mode<synchronous>, transform_indices = @transform_1, window_bounds = array<i64: 32, 128>}, {pipeline_mode = #tpu.pipeline_mode<synchronous>, transform_indices = @transform_2, window_bounds = array<i64: 1, 128>}, {transform_indices = @transform_3, window_bounds = array<i64: 8, 128>}]} {
    %c0 = arith.constant 0 : index
    %c0_0 = arith.constant 0 : index
    %0 = vector.load %arg3[%c0, %c0_0] : memref<8x32xf32, #tpu.memory_space<vmem>>, vector<8x32xf32>
    %c0_1 = arith.constant 0 : index
    %c0_2 = arith.constant 0 : index
    %1 = vector.load %arg4[%c0_1, %c0_2] : memref<32x128xf32, #tpu.memory_space<vmem>>, vector<32x128xf32>
    %cst = arith.constant dense<0.000000e+00> : vector<8x128xf32>
    %2 = tpu.matmul %0, %1, %cst {dimension_numbers = #tpu.dot_dimension_numbers<[1], [0], [0], [1], [0, 0, 1, 1], [], []>} : vector<8x32xf32>, vector<32x128xf32>, vector<8x128xf32> -> vector<8x128xf32>
    %c0_3 = arith.constant 0 : index
    %c0_4 = arith.constant 0 : index
    %3 = vector.load %arg5[%c0_3, %c0_4] : memref<1x128xf32, #tpu.memory_space<vmem>>, vector<1x128xf32>
    %4 = vector.broadcast %3 : vector<1x128xf32> to vector<8x128xf32>
    %5 = arith.addf %2, %4 : vector<8x128xf32>
    %c0_5 = arith.constant 0 : index
    %c0_6 = arith.constant 0 : index
    %6 = vector.load %arg6[%c0_5, %c0_6] : memref<8x128xf32, #tpu.memory_space<vmem>>, vector<8x128xf32>
    tpu.vector_store %arg6[%c0_5, %c0_6], %5 {strides = array<i32>} : memref<8x128xf32, #tpu.memory_space<vmem>>, vector<8x128xf32>,
    return
  }
  func.func @transform_0(%arg0: i32, %arg1: i32, %arg2: i32) -> (i32, i32) {
    %c0_i32 = arith.constant 0 : i32
    return %arg0, %arg2 : i32, i32
  }
  func.func @transform_1(%arg0: i32, %arg1: i32, %arg2: i32) -> (i32, i32) {
    %c0_i32 = arith.constant 0 : i32
    return %arg2, %arg1 : i32, i32
  }
  func.func @transform_2(%arg0: i32, %arg1: i32, %arg2: i32) -> (i32, i32) {
    %c0_i32 = arith.constant 0 : i32
    %c0_i32_0 = arith.constant 0 : i32
    return %c0_i32, %arg1 : i32, i32
  }
  func.func @transform_3(%arg0: i32, %arg1: i32, %arg2: i32) -> (i32, i32) {
    %c0_i32 = arith.constant 0 : i32
    return %arg0, %arg1 : i32, i32
  }
}

</mosaic_0001>

<bundles_post_ra>
// kernel: softmax_regression_forward.1
= control target key start
LH: loop header
LB: loop body
LE: loop exit
PB: predicated region body
PF: predicated region fallthrough
CT: control target
= control target key end

     0   :  { %8 = vsyncpa [#allocation3], 0  ;;  %s322_s0 = inlined_call_operand.hbm [shape: f32[8,32], index: 0, kind: input, shape index: {}]   ;;  %s323_s1 = inlined_call_operand.hbm [shape: f32[32,128], index: 1, kind: input, shape index: {}]   ;;  %s324_s2 = inlined_call_operand.vmem [shape: f32[1,128], index: 2, kind: input, shape index: {}]   ;;  %s325_s3 = inlined_call_operand.hbm [shape: f32[8,128], index: 3, kind: output, shape index: {}]  }
   0x1   :  { %9 = vsyncpa [#allocation6], 0 }
   0x2   :  { %10 = vsyncpa [#allocation4], 0  ;;  %s248_s12 = smov [#allocation2]   ;;  %s249_s14 = smov [#allocation5]  }
   0x3   :  { %s17_s13 = sshll.u32 %s248_s12, 4  ;;  %s26_s15 = sshll.u32 %s249_s14, 4  ;;  %s18_s13 = int_to_ptr.vmem [resolvable:$true] %s17_s13  ;;  %s276_s15 = int_to_ptr.vmem [resolvable:$true] %s26_s15 }
   0x4   :  { %s176_s18 = scalar_lea.hbm %s322_s0, 128 }
   0x5   :  { %p177_p0 = scmp.ne.s32.totalorder %s322_s0, %s176_s18  ;;  %p180_p1 = scmp.lt.u32.totalorder %s176_s18, %s322_s0 }
   0x7   :  { %p182_p2 = pnand %p180_p1, %p177_p0 }
   0x9   :  { %185 = shalt.err (!%p182_p2)
}
   0xa   :  { %s186_s23 = scalar_lea.vmem %s18_s13, 128  ;;  %p191_p4 = scmp.lt.s32.totalorder %s18_s13, %s18_s13 }
   0xb   :  { %p187_p3 = scmp.ne.s32.totalorder %s18_s13, %s186_s23  ;;  %p192_p5 = scmp.lt.s32.totalorder %s186_s23, %s186_s23 }
   0xd   :  { %p193_p6 = por %p192_p5, %p191_p4 }
   0xf   :  { %p194_p7 = pnand %p193_p6, %p187_p3 }
  0x11   :  { %197 = shalt.err (!%p194_p7)
}
  0x12   :  { %20 = dma.hbm_to_vmem [thread:$0]  %s322_s0, 128, %s18_s13, [#allocation3]  }
  0x13   :  { %s198_s28 = scalar_lea.hbm %s323_s1, 512 }
  0x14   :  { %p199_p8 = scmp.ne.s32.totalorder %s323_s1, %s198_s28  ;;  %p202_p9 = scmp.lt.u32.totalorder %s198_s28, %s323_s1 }
  0x16   :  { %p204_p10 = pnand %p202_p9, %p199_p8 }
  0x18   :  { %207 = shalt.err (!%p204_p10)
}
  0x19   :  { %s208_s6 = scalar_lea.vmem %s276_s15, 512  ;;  %p213_p12 = scmp.lt.s32.totalorder %s276_s15, %s276_s15 }
  0x1a   :  { %p209_p11 = scmp.ne.s32.totalorder %s276_s15, %s208_s6  ;;  %p214_p13 = scmp.lt.s32.totalorder %s208_s6, %s208_s6 }
  0x1c   :  { %p215_p0 = por %p214_p13, %p213_p12 }
  0x1e   :  { %p216_p1 = pnand %p215_p0, %p209_p11 }
  0x20   :  { %219 = shalt.err (!%p216_p1)
}
  0x21   :  { %s250_s0 = smov 128   ;;  %s251_s7 = smov 8  }
  0x22   :  { %32 = dma.hbm_to_vmem [thread:$0]  %s323_s1, 512, %s276_s15, [#allocation6], %s250_s0, %s250_s0, %s251_s7  }
  0x23   :  { %242 = dma.done.wait [#allocation3], 128  }
  0x24   :  { %243 = vsyncadd [#allocation3], 4294967168 }
  0x25   :  { %244 = dma.done.wait [#allocation6], 512  }
  0x26   :  { %245 = vsyncadd [#allocation6], 4294966784  ;;  %v252_v0 = vmov 0.0|0.0   ;;  %vm253_vm0 = vmmov 0   ;;  %v254_v1 = vmov 0.0   ;;  %v42_v2 = vld [vmem:[#allocation5] sm:$0xff] }
  0x27   :  { %162 = vmatprep.subr.bf16.mxu0 %v252_v0  ;;  %159 = vmatprep.mubr.msk.f32.mxu0 %vm253_vm0, %v254_v1  ;;  %v43_v3 = vld [vmem:[#allocation5 + $0x8] sm:$0xff]  ;;  %v44_v4 = vld [vmem:[#allocation5 + $0x10] sm:$0xff]  ;;  %v45_v6 = vld [vmem:[#allocation5 + $0x18] sm:$0xff]  ;;  %vm53_vm1 = vcmask 261120   ;;  %s255_s11 = smov [#allocation7]  }
  0x28   :  { %v163_v5 = vpack.c.bf16 %v43_v3, %v42_v2  ;;  %v166_v7 = vpack.c.bf16 %v45_v6, %v44_v4  ;;  %v41_v8 = vld [vmem:[#allocation2] sm:$0xff]  ;;  %s134_s12 = sshll.u32 %s255_s11, 4  ;;  %s135_s12 = int_to_ptr.vmem [resolvable:$true] %s134_s12 }
  0x29   :  { %v144_v9 = vld [vmem:[%s324_s2] ss:$0 sm:$0xff]  ;;  %s220_s13 = scalar_lea.vmem %s135_s12, 128  ;;  %p225_p3 = scmp.lt.s32.totalorder %s135_s12, %s135_s12 }
  0x2a   :  { %164 = vmatpush3.bf16.msra.mxu0 %v163_v5  ;;  %p221_p2 = scmp.ne.s32.totalorder %s135_s12, %s220_s13  ;;  %p226_p4 = scmp.lt.s32.totalorder %s220_s13, %s220_s13 }
  0x2b   :  { %165 = vmatprep.subr.bf16.mxu0 %v252_v0 }
  0x2c   :  { %p227_p5 = por %p226_p4, %p225_p3 }
  0x2e   :  { %167 = vmatpush3.bf16.msra.mxu0 %v166_v7  ;;  %p228_p6 = pnand %p227_p5, %p221_p2 }
  0x31   :  { %160 = vmatmul.mubr.msk.f32.vlgmr.msra.gmra.mrb[0].mxu0 %vm53_vm1, %v41_v8 }
 0x104   :  { %v123_v10 = vpop.f32.mrb[0].mxu0 }
 0x105   :  { %v124_v11 = vadd.f32 %v144_v9, %v123_v10  ;;  %v161_v12 = vpop.f32.mrb[1].mxu0 }
 0x107   :  { %127 = vst [vmem:[#allocation7] sm:$0xff] %v124_v11 }
 0x108   :  { %231 = shalt.err (!%p228_p6)
}
 0x109   :  { %s232_s16 = scalar_lea.hbm %s325_s3, 128 }
 0x10a   :  { %p233_p7 = scmp.ne.s32.totalorder %s325_s3, %s232_s16  ;;  %p236_p8 = scmp.lt.u32.totalorder %s232_s16, %s325_s3 }
 0x10c   :  { %p238_p9 = pnand %p236_p8, %p233_p7 }
 0x10e   :  { %241 = shalt.err (!%p238_p9)
}
 0x10f   :  { %137 = dma.vmem_to_hbm [thread:$0]  %s135_s12, 128, %s325_s3, [#allocation4]  }
 0x110   :  { %246 = dma.done.wait [#allocation4], 128  }
 0x111   :  { %247 = vsyncadd [#allocation4], 4294967168 }
 0x112   :  { %141 = vsyncpa [#allocation3], 1 }
 0x113   :  { %142 = vsyncpa [#allocation6], 1 }
 0x114   :  { %143 = vsyncpa [#allocation4], 1 }

</bundles_post_ra>
